<compile_context>
chip_gen: v7x
topology: tpu7x:2x2x1
jax: 0.10.0
libtpu: 0.0.40
codegen_flags: <defaults>
</compile_context>

<pallas_src>
import jax
import jax.numpy as jnp
from jax.experimental import pallas as pl
from jax.experimental.pallas import tpu as pltpu

H1 = 10
H2 = 10
OUT = 2

# Largest batch tile (rows) used per grid step. 512 rows x dim floats stays far
# under the 48 MiB VMEM budget for any reasonable flattened dim while amortizing
# the ~0.35 us per-grid-step overhead.
MAX_BLOCK_ROWS = 512


def _round_up(n, m):
    return ((n + m - 1) // m) * m


def _fc_2x10_kernel(x_ref, w1_ref, b1_ref, w2_ref, b2_ref, w3_ref, b3_ref, o_ref):
    # One (TB, dim) tile of x per grid step; weights/biases are VMEM-resident.
    x = x_ref[...]

    h1 = jnp.dot(x, w1_ref[...], preferred_element_type=jnp.float32) + b1_ref[...]
    h1 = jnp.maximum(h1, 0.0)

    h2 = jnp.dot(h1, w2_ref[...], preferred_element_type=jnp.float32) + b2_ref[...]
    h2 = jnp.maximum(h2, 0.0)

    y = jnp.dot(h2, w3_ref[...], preferred_element_type=jnp.float32) + b3_ref[...]
    o_ref[...] = y.astype(o_ref.dtype)


def fc_2x10_forward(x, params, *, block_rows=MAX_BLOCK_ROWS):
    """x: any shape whose trailing dims flatten to `dim` (matches x.reshape(-1, dim))."""
    w1, b1, w2, b2, w3, b3 = params
    dim = w1.shape[0]
    x2d = x.reshape(-1, dim)
    batch = x2d.shape[0]

    # Batch tile: multiple of 8 (sublane granularity), capped at block_rows.
    tb = min(block_rows, _round_up(batch, 8))
    padded = _round_up(batch, tb)
    if padded != batch:
        x2d = jnp.pad(x2d, ((0, padded - batch), (0, 0)))
    grid = (padded // tb,)

    # Weights/biases: same block index every grid step -> stay resident in VMEM.
    def resident(shape):
        return pl.BlockSpec(shape, lambda i: tuple(0 for _ in shape))

    itemsize = jnp.dtype(x2d.dtype).itemsize
    weight_bytes = sum(
        int(a.size) * jnp.dtype(a.dtype).itemsize for a in (w1, b1, w2, b2, w3, b3)
    )
    cost = pl.CostEstimate(
        flops=2 * batch * (dim * H1 + H1 * H2 + H2 * OUT),
        transcendentals=0,
        bytes_accessed=batch * dim * itemsize + batch * OUT * 4 + weight_bytes,
    )

    out = pl.pallas_call(
        _fc_2x10_kernel,
        out_shape=jax.ShapeDtypeStruct((padded, OUT), jnp.float32),
        grid=grid,
        in_specs=[
            pl.BlockSpec((tb, dim), lambda i: (i, 0)),   # streamed x tile
            resident((dim, H1)),
            resident((1, H1)),
            resident((H1, H2)),
            resident((1, H2)),
            resident((H2, OUT)),
            resident((1, OUT)),
        ],
        out_specs=pl.BlockSpec((tb, OUT), lambda i: (i, 0)),
        compiler_params=pltpu.CompilerParams(
            dimension_semantics=("parallel",),   # v7x: shard batch tiles across 2 TCs
            vmem_limit_bytes=48 << 20,           # stays safe on v7x's 64 MiB VMEM
        ),
        cost_estimate=cost,
    )(x2d, w1, b1, w2, b2, w3, b3)

    return out[:batch]


def init_params(key, dim):
    """Deterministic init matching nn.Linear's U(-1/sqrt(fan_in), 1/sqrt(fan_in))."""
    ks = jax.random.split(key, 6)

    def linear(kw, kb, fan_in, fan_out):
        bound = 1.0 / jnp.sqrt(jnp.float32(fan_in))
        w = jax.random.uniform(kw, (fan_in, fan_out), jnp.float32, -bound, bound)
        b = jax.random.uniform(kb, (1, fan_out), jnp.float32, -bound, bound)
        return w, b

    w1, b1 = linear(ks[0], ks[1], dim, H1)
    w2, b2 = linear(ks[2], ks[3], H1, H2)
    w3, b3 = linear(ks[4], ks[5], H2, OUT)
    return (w1, b1, w2, b2, w3, b3)


def reference_forward(x, params):
    w1, b1, w2, b2, w3, b3 = params
    x2d = x.reshape(-1, w1.shape[0])
    h1 = jax.nn.relu(x2d @ w1 + b1)
    h2 = jax.nn.relu(h1 @ w2 + b2)
    return h2 @ w3 + b3


if __name__ == "__main__":
    key = jax.random.PRNGKey(0)
    k_x, k_x2, k_p = jax.random.split(key, 3)

    dim = 32  # FC_2x10(dim=32)
    params = init_params(k_p, dim)

    # Case 1: batch that is a multiple of 8.
    x = jax.random.normal(k_x, (8, dim), jnp.float32)
    out = jax.block_until_ready(fc_2x10_forward(x, params))
    ref = reference_forward(x, params)
    assert out.shape == (8, OUT)
    assert jnp.allclose(out, ref, atol=1e-4, rtol=1e-4), "mismatch vs reference (batch=8)"

    # Case 2: ragged batch exercising the pad-and-slice path.
    x2 = jax.random.normal(k_x2, (13, dim), jnp.float32)
    out2 = jax.block_until_ready(fc_2x10_forward(x2, params))
    ref2 = reference_forward(x2, params)
    assert out2.shape == (13, OUT)
    assert jnp.allclose(out2, ref2, atol=1e-4, rtol=1e-4), "mismatch vs reference (batch=13)"

    print("KERNEL_OK")
</pallas_src>

<mosaic_0001>
module attributes {stable_mosaic.version = 11 : i64} {
  func.func @_fc_2x10_kernel(%arg0: i32, %arg1: memref<8x32xf32, #tpu.memory_space<vmem>>, %arg2: memref<32x10xf32, #tpu.memory_space<vmem>>, %arg3: memref<1x10xf32, #tpu.memory_space<vmem>>, %arg4: memref<10x10xf32, #tpu.memory_space<vmem>>, %arg5: memref<1x10xf32, #tpu.memory_space<vmem>>, %arg6: memref<10x2xf32, #tpu.memory_space<vmem>>, %arg7: memref<1x2xf32, #tpu.memory_space<vmem>>, %arg8: memref<8x2xf32, #tpu.memory_space<vmem>>) attributes {dimension_semantics = [#tpu.dimension_semantics<parallel>], iteration_bounds = array<i64: 1>, scalar_prefetch = 0 : i64, scratch_operands = 0 : i64, tpu.core_type = #tpu.core_type<tc>, window_params = [{transform_indices = @transform_0, window_bounds = array<i64: 8, 32>}, {pipeline_mode = #tpu.pipeline_mode<synchronous>, transform_indices = @transform_1, window_bounds = array<i64: 32, 10>}, {pipeline_mode = #tpu.pipeline_mode<synchronous>, transform_indices = @transform_2, window_bounds = array<i64: 1, 10>}, {pipeline_mode = #tpu.pipeline_mode<synchronous>, transform_indices = @transform_3, window_bounds = array<i64: 10, 10>}, {pipeline_mode = #tpu.pipeline_mode<synchronous>, transform_indices = @transform_4, window_bounds = array<i64: 1, 10>}, {pipeline_mode = #tpu.pipeline_mode<synchronous>, transform_indices = @transform_5, window_bounds = array<i64: 10, 2>}, {pipeline_mode = #tpu.pipeline_mode<synchronous>, transform_indices = @transform_6, window_bounds = array<i64: 1, 2>}, {transform_indices = @transform_7, window_bounds = array<i64: 8, 2>}]} {
    %c0 = arith.constant 0 : index
    %c0_0 = arith.constant 0 : index
    %0 = vector.load %arg1[%c0, %c0_0] : memref<8x32xf32, #tpu.memory_space<vmem>>, vector<8x32xf32>
    %c0_1 = arith.constant 0 : index
    %c0_2 = arith.constant 0 : index
    %1 = vector.load %arg2[%c0_1, %c0_2] : memref<32x10xf32, #tpu.memory_space<vmem>>, vector<32x10xf32>
    %cst = arith.constant dense<0.000000e+00> : vector<8x10xf32>
    %2 = tpu.matmul %0, %1, %cst {dimension_numbers = #tpu.dot_dimension_numbers<[1], [0], [0], [1], [0, 0, 1, 1], [], []>} : vector<8x32xf32>, vector<32x10xf32>, vector<8x10xf32> -> vector<8x10xf32>
    %c0_3 = arith.constant 0 : index
    %c0_4 = arith.constant 0 : index
    %3 = vector.load %arg3[%c0_3, %c0_4] : memref<1x10xf32, #tpu.memory_space<vmem>>, vector<1x10xf32>
    %4 = vector.broadcast %3 : vector<1x10xf32> to vector<8x10xf32>
    %5 = arith.addf %2, %4 : vector<8x10xf32>
    %cst_5 = arith.constant 0.000000e+00 : f32
    %6 = vector.broadcast %cst_5 : f32 to vector<8x10xf32>
    %7 = arith.maximumf %5, %6 : vector<8x10xf32>
    %c0_6 = arith.constant 0 : index
    %c0_7 = arith.constant 0 : index
    %8 = vector.load %arg4[%c0_6, %c0_7] : memref<10x10xf32, #tpu.memory_space<vmem>>, vector<10x10xf32>
    %cst_8 = arith.constant dense<0.000000e+00> : vector<8x10xf32>
    %9 = tpu.matmul %7, %8, %cst_8 {dimension_numbers = #tpu.dot_dimension_numbers<[1], [0], [0], [1], [0, 0, 1, 1], [], []>} : vector<8x10xf32>, vector<10x10xf32>, vector<8x10xf32> -> vector<8x10xf32>
    %c0_9 = arith.constant 0 : index
    %c0_10 = arith.constant 0 : index
    %10 = vector.load %arg5[%c0_9, %c0_10] : memref<1x10xf32, #tpu.memory_space<vmem>>, vector<1x10xf32>
    %11 = vector.broadcast %10 : vector<1x10xf32> to vector<8x10xf32>
    %12 = arith.addf %9, %11 : vector<8x10xf32>
    %cst_11 = arith.constant 0.000000e+00 : f32
    %13 = vector.broadcast %cst_11 : f32 to vector<8x10xf32>
    %14 = arith.maximumf %12, %13 : vector<8x10xf32>
    %c0_12 = arith.constant 0 : index
    %c0_13 = arith.constant 0 : index
    %15 = vector.load %arg6[%c0_12, %c0_13] : memref<10x2xf32, #tpu.memory_space<vmem>>, vector<10x2xf32>
    %cst_14 = arith.constant dense<0.000000e+00> : vector<8x2xf32>
    %16 = tpu.matmul %14, %15, %cst_14 {dimension_numbers = #tpu.dot_dimension_numbers<[1], [0], [0], [1], [0, 0, 1, 1], [], []>} : vector<8x10xf32>, vector<10x2xf32>, vector<8x2xf32> -> vector<8x2xf32>
    %c0_15 = arith.constant 0 : index
    %c0_16 = arith.constant 0 : index
    %17 = vector.load %arg7[%c0_15, %c0_16] : memref<1x2xf32, #tpu.memory_space<vmem>>, vector<1x2xf32>
    %18 = vector.broadcast %17 : vector<1x2xf32> to vector<8x2xf32>
    %19 = arith.addf %16, %18 : vector<8x2xf32>
    %c0_17 = arith.constant 0 : index
    %c0_18 = arith.constant 0 : index
    %20 = vector.load %arg8[%c0_17, %c0_18] : memref<8x2xf32, #tpu.memory_space<vmem>>, vector<8x2xf32>
    tpu.vector_store %arg8[%c0_17, %c0_18], %19 {strides = array<i32>} : memref<8x2xf32, #tpu.memory_space<vmem>>, vector<8x2xf32>,
    return
  }
  func.func @transform_0(%arg0: i32) -> (i32, i32) {
    %c0_i32 = arith.constant 0 : i32
    %c0_i32_0 = arith.constant 0 : i32
    return %arg0, %c0_i32 : i32, i32
  }
  func.func @transform_1(%arg0: i32) -> (i32, i32) {
    %c0_i32 = arith.constant 0 : i32
    %c0_i32_0 = arith.constant 0 : i32
    %c0_i32_1 = arith.constant 0 : i32
    return %c0_i32, %c0_i32_0 : i32, i32
  }
  func.func @transform_2(%arg0: i32) -> (i32, i32) {
    %c0_i32 = arith.constant 0 : i32
    %c0_i32_0 = arith.constant 0 : i32
    %c0_i32_1 = arith.constant 0 : i32
    return %c0_i32, %c0_i32_0 : i32, i32
  }
  func.func @transform_3(%arg0: i32) -> (i32, i32) {
    %c0_i32 = arith.constant 0 : i32
    %c0_i32_0 = arith.constant 0 : i32
    %c0_i32_1 = arith.constant 0 : i32
    return %c0_i32, %c0_i32_0 : i32, i32
  }
  func.func @transform_4(%arg0: i32) -> (i32, i32) {
    %c0_i32 = arith.constant 0 : i32
    %c0_i32_0 = arith.constant 0 : i32
    %c0_i32_1 = arith.constant 0 : i32
    return %c0_i32, %c0_i32_0 : i32, i32
  }
  func.func @transform_5(%arg0: i32) -> (i32, i32) {
    %c0_i32 = arith.constant 0 : i32
    %c0_i32_0 = arith.constant 0 : i32
    %c0_i32_1 = arith.constant 0 : i32
    return %c0_i32, %c0_i32_0 : i32, i32
  }
  func.func @transform_6(%arg0: i32) -> (i32, i32) {
    %c0_i32 = arith.constant 0 : i32
    %c0_i32_0 = arith.constant 0 : i32
    %c0_i32_1 = arith.constant 0 : i32
    return %c0_i32, %c0_i32_0 : i32, i32
  }
  func.func @transform_7(%arg0: i32) -> (i32, i32) {
    %c0_i32 = arith.constant 0 : i32
    %c0_i32_0 = arith.constant 0 : i32
    return %arg0, %c0_i32 : i32, i32
  }
}

</mosaic_0001>

<bundles_post_ra>
// kernel: tpu_custom_call.1
= control target key start
LH: loop header
LB: loop body
LE: loop exit
PB: predicated region body
PF: predicated region fallthrough
CT: control target
= control target key end

     0   :  { %v354_v0 = vmov 0.0|0.0   ;;  %vm355_vm0 = vmmov 0   ;;  %v356_v4 = vmov 0.0   ;;  %vm38_vm1 = vcmask 261120   ;;  %s448_s1 = inlined_call_operand.vmem [shape: f32[32,10], index: 1, kind: input, shape index: {}]   ;;  %s449_s0 = inlined_call_operand.vmem [shape: f32[8,32], index: 0, kind: input, shape index: {}]   ;;  %s450_s3 = inlined_call_operand.vmem [shape: f32[10,10], index: 3, kind: input, shape index: {}]   ;;  %s451_s2 = inlined_call_operand.vmem [shape: f32[1,10], index: 2, kind: input, shape index: {}]   ;;  %s452_s5 = inlined_call_operand.vmem [shape: f32[10,2], index: 5, kind: input, shape index: {}]   ;;  %s453_s4 = inlined_call_operand.vmem [shape: f32[1,10], index: 4, kind: input, shape index: {}]   ;;  %s454_s6 = inlined_call_operand.vmem [shape: f32[1,2], index: 6, kind: input, shape index: {}]   ;;  %s455_s7 = inlined_call_operand.vmem [shape: f32[8,2], index: 7, kind: output, shape index: {}]  }
   0x1   :  { %336 = vmatprep.subr.bf16.mxu0 %v354_v0  ;;  %v27_v1 = vld [vmem:[%s448_s1] sm:$0xff]  ;;  %v28_v2 = vld [vmem:[%s448_s1 + $0x8] sm:$0xff]  ;;  %v29_v3 = vld [vmem:[%s448_s1 + $0x10] sm:$0xff]  ;;  %319 = vmatprep.mubr.msk.f32.mxu0 %vm355_vm0, %v356_v4  ;;  %vm126_vm2 = vcmask 1041408   ;;  %vm357_vm3 = vmmov 1   ;;  %vm122_vm5 = vcmask 80896  }
   0x2   :  { %v337_v5 = vpack.c.bf16 %v28_v2, %v27_v1  ;;  %v30_v6 = vld [vmem:[%s448_s1 + $0x18] sm:$0xff]  ;;  %342 = vmatprep.subr.bf16.mxu1 %v354_v0  ;;  %326 = vmatprep.mubr.msk.f32.mxu1 %vm355_vm0, %v356_v4  ;;  %v26_v8 = vld [vmem:[%s449_s0] sm:$0xff]  ;;  %v114_v10 = vld [vmem:[%s450_s3 + $0x8] sm:$0x3]  ;;  %vm286_vm6 = vcmask 15360  }
   0x3   :  { %v340_v7 = vpack.c.bf16 %v30_v6, %v29_v3  ;;  %v113_v9 = vld [vmem:[%s450_s3] sm:$0xff]  ;;  %vm421_vm4 = vmpackc.low %vm126_vm2, %vm357_vm3  ;;  %v202_v19 = vld [vmem:[%s452_s5 + $0x8] sm:$0x3] }
   0x4   :  { %338 = vmatpush3.bf16.msra.mxu0 %v337_v5  ;;  %v343_v11 = vpack.c.bf16 %v114_v10, %v113_v9  ;;  %v292_v13 = vld [vmem:[%s451_s2] ss:$0 sm:$0xff] }
   0x5   :  { %339 = vmatprep.subr.bf16.mxu0 %v354_v0  ;;  %v201_v18 = vld [vmem:[%s452_s5] sm:$0xff] }
   0x6   :  { %345 = vmatpush3.bf16.msk.msra.mxu1 %vm421_vm4, %v343_v11  ;;  %v347_v20 = vpack.c.bf16 %v202_v19, %v201_v18  ;;  %v294_v21 = vld [vmem:[%s453_s4] ss:$0 sm:$0xff] }
   0x7   :  { %346 = vmatprep.subr.bf16.mxu1 %v354_v0  ;;  %v297_v26 = vld [vmem:[%s454_s6] ss:$0 sm:$0xff] }
   0x8   :  { %341 = vmatpush3.bf16.msra.mxu0 %v340_v7 }
   0xb   :  { %320 = vmatmul.mubr.msk.f32.vlgmr.msra.gmra.mrb[0].mxu0 %vm38_vm1, %v26_v8 }
  0xde   :  { %v108_v14 = vpop.f32.mrb[0].mxu0 }
  0xdf   :  { %v109_v15 = vadd.f32 %v292_v13, %v108_v14  ;;  %v321_v16 = vpop.f32.mrb[1].mxu0 }
  0xe1   :  { %v112_v17 = vmax.f32 %v109_v15, 0.0 }
  0xe3   :  { %327 = vmatmul.mubr.msk.f32.vlgmr.msra.gmra.mrb[0].mxu1 %vm122_vm5, %v112_v17 }
  0xe4   :  { %333 = vmatprep.mubr.msk.f32.mxu1 %vm355_vm0, %v356_v4  ;;  %349 = vmatpush3.bf16.msk.msra.mxu1 %vm421_vm4, %v347_v20 }
 0x1b6   :  { %v196_v22 = vpop.f32.mrb[0].mxu1 }
 0x1b7   :  { %v197_v23 = vadd.f32 %v294_v21, %v196_v22  ;;  %v328_v24 = vpop.f32.mrb[1].mxu1 }
 0x1b9   :  { %v200_v25 = vmax.f32 %v197_v23, 0.0 }
 0x1bb   :  { %334 = vmatmul.mubr.msk.f32.vlgmr.msra.gmra.mrb[2].mxu1 %vm122_vm5, %v200_v25 }
 0x28e   :  { %v282_v27 = vpop.f32.mrb[2].mxu1 }
 0x28f   :  { %v283_v28 = vadd.f32 %v297_v26, %v282_v27  ;;  %v335_v29 = vpop.f32.mrb[3].mxu1 }
 0x291   :  { %287 = vst.msk [vmem:[%s455_s7] sm:$0xff] %vm286_vm6, %v283_v28 }

</bundles_post_ra>
